<compile_context>
chip_gen: v7x
topology: tpu7x:2x2x1
jax: 0.10.0
libtpu: 0.0.40
codegen_flags: <defaults>
</compile_context>

<pallas_src>
import functools

import jax
import jax.numpy as jnp
from jax import lax
from jax.experimental import pallas as pl
from jax.experimental.pallas import tpu as pltpu


# Sublane alignment for packed dtypes: f32 rows -> 8, bf16 -> 16, int8/fp8 -> 32.
_SUBLANE_ALIGN = {4: 8, 2: 16, 1: 32}


def _vmem_capacity_bytes():
    """Physical per-TensorCore VMEM; conservative v7x default on failure."""
    try:
        return int(pltpu.get_tpu_info().vmem_capacity_bytes)
    except Exception:
        return 64 * 1024 * 1024


def _pick_block_rows(D, itemsize, vmem_cap):
    # Steady-state VMEM working set per batch row:
    #   2 inputs x 2 pipeline buffers in native dtype  -> 4 * D * itemsize
    #   ~3 f32-sized temporaries (upcasts / products)  -> 3 * D * 4
    bytes_per_row = D * (4 * itemsize + 3 * 4)
    budget = int(vmem_cap * 0.55)               # headroom for output/spills
    tb = budget // max(1, bytes_per_row)
    # Additionally cap each single pipelined input buffer at ~8 MiB.
    tb = min(tb, (8 * 1024 * 1024) // max(1, D * itemsize))
    return max(8, tb)


def _cosine_loss_kernel(x_ref, y_ref, o_ref, *, batch, block_rows, eps,
                        mask_partial):
    # x_ref, y_ref: (TB, D) tiles in VMEM.  o_ref: (TB, 1) per-row loss block.
    x = x_ref[...].astype(jnp.float32)
    y = y_ref[...].astype(jnp.float32)

    # Per-row reductions; keepdims keeps intermediates 2-D (TB, 1).
    dot = jnp.sum(x * y, axis=-1, keepdims=True)   # (TB, 1)
    xx = jnp.sum(x * x, axis=-1, keepdims=True)    # (TB, 1)
    yy = jnp.sum(y * y, axis=-1, keepdims=True)    # (TB, 1)

    # 1 - dot / (||x|| * ||y||) with a single rsqrt (EUP) and an eps clamp on
    # the norm product (||x||*||y|| >= eps  <=>  xx*yy >= eps^2).
    inv_norm = lax.rsqrt(jnp.maximum(xx * yy, jnp.float32(eps) ** 2))
    per_row = 1.0 - dot * inv_norm                 # (TB, 1)

    if mask_partial:
        # Only generated when B % TB != 0: zero rows past the true batch size
        # (select, so NaN/Inf from uninitialized padded rows cannot leak).
        row_ids = (pl.program_id(0) * block_rows
                   + lax.broadcasted_iota(jnp.int32, per_row.shape, 0))
        per_row = jnp.where(row_ids < batch, per_row, 0.0)

    o_ref[...] = per_row


def cosine_loss(input_arr, target_arr, *, block_rows=None, eps=1e-8):
    """Pallas TPU implementation of CosineLoss.forward."""
    x = jnp.asarray(input_arr)   # keep native dtype in HBM; cast in-kernel
    y = jnp.asarray(target_arr)
    if x.ndim == 1:
        x = x[None, :]
        y = y[None, :]
    B, D = x.shape

    itemsize = max(jnp.dtype(x.dtype).itemsize, jnp.dtype(y.dtype).itemsize)
    vmem_cap = _vmem_capacity_bytes()

    if block_rows is None:
        block_rows = _pick_block_rows(D, itemsize, vmem_cap)

    align = _SUBLANE_ALIGN.get(itemsize, 8)
    if block_rows >= B:
        tb = B                                   # single full-extent tile
    else:
        tb = max(align, (block_rows // align) * align)  # packed-sublane aligned

    grid_rows = pl.cdiv(B, tb)
    out_rows = grid_rows * tb
    mask_partial = out_rows != B                 # static: build mask only if needed

    kernel = functools.partial(
        _cosine_loss_kernel, batch=B, block_rows=tb, eps=eps,
        mask_partial=mask_partial,
    )

    vmem_limit = int(min(0.8 * vmem_cap, 96 * 1024 * 1024))

    per_row = pl.pallas_call(
        kernel,
        grid=(grid_rows,),
        in_specs=[
            pl.BlockSpec((tb, D), lambda i: (i, 0)),
            pl.BlockSpec((tb, D), lambda i: (i, 0)),
        ],
        out_specs=pl.BlockSpec((tb, 1), lambda i: (i, 0)),
        out_shape=jax.ShapeDtypeStruct((out_rows, 1), jnp.float32),
        compiler_params=pltpu.CompilerParams(
            # Every grid step writes an independent output block -> parallel
            # (lets v7x shard the batch axis across both TensorCores).
            dimension_semantics=("parallel",),
            vmem_limit_bytes=vmem_limit,
        ),
    )(x, y)

    # Padded rows (if any) were zeroed in-kernel; mean over the true batch.
    return jnp.sum(per_row) * jnp.float32(1.0 / B)


def cosine_loss_ref(x, y):
    x = jnp.asarray(x, jnp.float32)
    y = jnp.asarray(y, jnp.float32)
    if x.ndim == 1:
        x = x[None, :]
        y = y[None, :]
    dot = jnp.sum(x * y, axis=-1)
    nx = jnp.linalg.norm(x, axis=-1)
    ny = jnp.linalg.norm(y, axis=-1)
    return jnp.mean(1.0 - dot / (nx * ny))


if __name__ == "__main__":
    key = jax.random.PRNGKey(0)
    k1, k2, k3, k4, k5, k6 = jax.random.split(key, 6)

    # 2-D batched case: batch=8, hidden=32 (single tile path)
    x2d = jax.random.normal(k1, (8, 32), dtype=jnp.float32)
    y2d = jax.random.normal(k2, (8, 32), dtype=jnp.float32)
    out2d = jax.block_until_ready(cosine_loss(x2d, y2d))
    ref2d = cosine_loss_ref(x2d, y2d)
    assert jnp.allclose(out2d, ref2d, atol=1e-5, rtol=1e-5), (out2d, ref2d)

    # 1-D case: hidden=32
    x1d = jax.random.normal(k3, (32,), dtype=jnp.float32)
    y1d = jax.random.normal(k4, (32,), dtype=jnp.float32)
    out1d = jax.block_until_ready(cosine_loss(x1d, y1d))
    ref1d = cosine_loss_ref(x1d, y1d)
    assert jnp.allclose(out1d, ref1d, atol=1e-5, rtol=1e-5), (out1d, ref1d)

    # Multi-tile + masked partial last tile: B=20 with forced 8-row tiles
    xm = jax.random.normal(k5, (20, 32), dtype=jnp.float32)
    ym = jax.random.normal(k6, (20, 32), dtype=jnp.float32)
    outm = jax.block_until_ready(cosine_loss(xm, ym, block_rows=8))
    refm = cosine_loss_ref(xm, ym)
    assert jnp.allclose(outm, refm, atol=1e-5, rtol=1e-5), (outm, refm)

    # Native bf16 inputs (cast happens inside the kernel, not in the wrapper)
    xb = x2d.astype(jnp.bfloat16)
    yb = y2d.astype(jnp.bfloat16)
    outb = jax.block_until_ready(cosine_loss(xb, yb))
    refb = cosine_loss_ref(xb, yb)
    assert jnp.allclose(outb, refb, atol=1e-4, rtol=1e-4), (outb, refb)

    print("KERNEL_OK")
</pallas_src>

<mosaic_0001>
module attributes {stable_mosaic.version = 11 : i64} {
  func.func @_cosine_loss_kernel(%arg0: i32, %arg1: memref<8x32xf32, #tpu.memory_space<vmem>>, %arg2: memref<8x32xf32, #tpu.memory_space<vmem>>, %arg3: memref<8x1xf32, #tpu.memory_space<vmem>>) attributes {dimension_semantics = [#tpu.dimension_semantics<parallel>], iteration_bounds = array<i64: 1>, scalar_prefetch = 0 : i64, scratch_operands = 0 : i64, tpu.core_type = #tpu.core_type<tc>, window_params = [{transform_indices = @transform_0, window_bounds = array<i64: 8, 32>}, {transform_indices = @transform_1, window_bounds = array<i64: 8, 32>}, {transform_indices = @transform_2, window_bounds = array<i64: 8, 1>}]} {
    %c0 = arith.constant 0 : index
    %c0_0 = arith.constant 0 : index
    %0 = vector.load %arg1[%c0, %c0_0] : memref<8x32xf32, #tpu.memory_space<vmem>>, vector<8x32xf32>
    %c0_1 = arith.constant 0 : index
    %c0_2 = arith.constant 0 : index
    %1 = vector.load %arg2[%c0_1, %c0_2] : memref<8x32xf32, #tpu.memory_space<vmem>>, vector<8x32xf32>
    %2 = arith.mulf %0, %1 : vector<8x32xf32>
    %cst = arith.constant dense<0.000000e+00> : vector<8xf32>
    %3 = vector.multi_reduction <add>, %2, %cst [1] : vector<8x32xf32> to vector<8xf32>
    %4 = vector.shape_cast %3 : vector<8xf32> to vector<8x1xf32>
    %5 = arith.mulf %0, %0 : vector<8x32xf32>
    %cst_3 = arith.constant dense<0.000000e+00> : vector<8xf32>
    %6 = vector.multi_reduction <add>, %5, %cst_3 [1] : vector<8x32xf32> to vector<8xf32>
    %7 = vector.shape_cast %6 : vector<8xf32> to vector<8x1xf32>
    %8 = arith.mulf %1, %1 : vector<8x32xf32>
    %cst_4 = arith.constant dense<0.000000e+00> : vector<8xf32>
    %9 = vector.multi_reduction <add>, %8, %cst_4 [1] : vector<8x32xf32> to vector<8xf32>
    %10 = vector.shape_cast %9 : vector<8xf32> to vector<8x1xf32>
    %11 = arith.mulf %7, %10 : vector<8x1xf32>
    %cst_5 = arith.constant 9.99999993E-9 : f32
    %12 = arith.mulf %cst_5, %cst_5 : f32
    %13 = vector.broadcast %12 : f32 to vector<8x1xf32>
    %14 = arith.maximumf %11, %13 : vector<8x1xf32>
    %15 = math.rsqrt %14 : vector<8x1xf32>
    %16 = arith.mulf %4, %15 : vector<8x1xf32>
    %cst_6 = arith.constant 1.000000e+00 : f32
    %17 = vector.broadcast %cst_6 : f32 to vector<8x1xf32>
    %18 = arith.subf %17, %16 : vector<8x1xf32>
    %c0_7 = arith.constant 0 : index
    %c0_8 = arith.constant 0 : index
    %19 = vector.load %arg3[%c0_7, %c0_8] : memref<8x1xf32, #tpu.memory_space<vmem>>, vector<8x1xf32>
    tpu.vector_store %arg3[%c0_7, %c0_8], %18 {strides = array<i32>} : memref<8x1xf32, #tpu.memory_space<vmem>>, vector<8x1xf32>,
    return
  }
  func.func @transform_0(%arg0: i32) -> (i32, i32) {
    %c0_i32 = arith.constant 0 : i32
    %c0_i32_0 = arith.constant 0 : i32
    return %arg0, %c0_i32 : i32, i32
  }
  func.func @transform_1(%arg0: i32) -> (i32, i32) {
    %c0_i32 = arith.constant 0 : i32
    %c0_i32_0 = arith.constant 0 : i32
    return %arg0, %c0_i32 : i32, i32
  }
  func.func @transform_2(%arg0: i32) -> (i32, i32) {
    %c0_i32 = arith.constant 0 : i32
    %c0_i32_0 = arith.constant 0 : i32
    return %arg0, %c0_i32 : i32, i32
  }
}

</mosaic_0001>

<bundles_post_ra>
// kernel: tpu_custom_call.1
= control target key start
LH: loop header
LB: loop body
LE: loop exit
PB: predicated region body
PF: predicated region fallthrough
CT: control target
= control target key end

     0   :  { %7 = vsyncpa [#allocation3], 0  ;;  %s159_s0 = inlined_call_operand.hbm [shape: f32[8,32], index: 0, kind: input, shape index: {}]   ;;  %s160_s1 = inlined_call_operand.hbm [shape: f32[8,32], index: 1, kind: input, shape index: {}]   ;;  %s161_s2 = inlined_call_operand.vmem [shape: f32[8,1], index: 2, kind: output, shape index: {}]  }
   0x1   :  { %8 = vsyncpa [#allocation5], 0  ;;  %s115_s9 = smov [#allocation2]   ;;  %s116_s11 = smov [#allocation4]  }
   0x2   :  { %s15_s10 = sshll.u32 %s115_s9, 4  ;;  %s25_s12 = sshll.u32 %s116_s11, 4  ;;  %s16_s10 = int_to_ptr.vmem [resolvable:$true] %s15_s10  ;;  %s26_s12 = int_to_ptr.vmem [resolvable:$true] %s25_s12 }
   0x3   :  { %s67_s15 = scalar_lea.hbm %s159_s0, 128 }
   0x4   :  { %p68_p0 = scmp.ne.s32.totalorder %s159_s0, %s67_s15  ;;  %p71_p1 = scmp.lt.u32.totalorder %s67_s15, %s159_s0 }
   0x6   :  { %p73_p2 = pnand %p71_p1, %p68_p0 }
   0x8   :  { %76 = shalt.err (!%p73_p2)
}
   0x9   :  { %s77_s20 = scalar_lea.vmem %s16_s10, 128  ;;  %p82_p4 = scmp.lt.s32.totalorder %s16_s10, %s16_s10 }
   0xa   :  { %p78_p3 = scmp.ne.s32.totalorder %s16_s10, %s77_s20  ;;  %p83_p5 = scmp.lt.s32.totalorder %s77_s20, %s77_s20 }
   0xc   :  { %p84_p6 = por %p83_p5, %p82_p4 }
   0xe   :  { %p85_p7 = pnand %p84_p6, %p78_p3 }
  0x10   :  { %88 = shalt.err (!%p85_p7)
}
  0x11   :  { %18 = dma.hbm_to_vmem [thread:$0]  %s159_s0, 128, %s16_s10, [#allocation3]  }
  0x12   :  { %s89_s25 = scalar_lea.hbm %s160_s1, 128 }
  0x13   :  { %p90_p8 = scmp.ne.s32.totalorder %s160_s1, %s89_s25  ;;  %p93_p9 = scmp.lt.u32.totalorder %s89_s25, %s160_s1 }
  0x15   :  { %p95_p10 = pnand %p93_p9, %p90_p8 }
  0x17   :  { %98 = shalt.err (!%p95_p10)
}
  0x18   :  { %s99_s30 = scalar_lea.vmem %s26_s12, 128  ;;  %p104_p12 = scmp.lt.s32.totalorder %s26_s12, %s26_s12 }
  0x19   :  { %p100_p11 = scmp.ne.s32.totalorder %s26_s12, %s99_s30  ;;  %p105_p13 = scmp.lt.s32.totalorder %s99_s30, %s99_s30 }
  0x1b   :  { %p106_p0 = por %p105_p13, %p104_p12 }
  0x1d   :  { %p107_p1 = pnand %p106_p0, %p100_p11 }
  0x1f   :  { %110 = shalt.err (!%p107_p1)
}
  0x20   :  { %28 = dma.hbm_to_vmem [thread:$0]  %s160_s1, 128, %s26_s12, [#allocation5]  }
  0x21   :  { %111 = dma.done.wait [#allocation3], 128  }
  0x22   :  { %112 = vsyncadd [#allocation3], 4294967168 }
  0x23   :  { %113 = dma.done.wait [#allocation5], 128  }
  0x24   :  { %114 = vsyncadd [#allocation5], 4294967168  ;;  %v35_v0 = vld [vmem:[#allocation2] sm:$0xff]  ;;  %vm38_vm0 = vcmask 261120   ;;  %v36_v1 = vld [vmem:[#allocation4] sm:$0xff]  ;;  %vm55_vm1 = vcmask 7168  }
  0x25   :  { %v42_v2 = vmul.f32 %v35_v0, %v35_v0  ;;  %v46_v3 = vmul.f32 %v36_v1, %v36_v1  ;;  %v37_v4 = vmul.f32 %v36_v1, %v35_v0 }
  0x27   :  { %v43_v5 = vsel %vm38_vm0, %v42_v2, 0.0  ;;  %v39_v6 = vsel %vm38_vm0, %v37_v4, 0.0  ;;  %v47_v7 = vsel %vm38_vm0, %v46_v3, 0.0 }
  0x28   :  { %44 = vadd.xlane.f32.xlu0 %v43_v5  ;;  %40 = vadd.xlane.f32.xlu1 %v39_v6 }
  0x2c   :  { %48 = vadd.xlane.f32.xlu0 %v47_v7 }
  0xb5   :  { %v45_v8 = vpop.xlane.xlu0 %44  ;;  %v41_v12 = vpop.xlane.xlu1 %40 }
  0xb9   :  { %v49_v9 = vpop.xlane.xlu0 %48 }
  0xba   :  { %v50_v10 = vmul.f32 %v49_v9, %v45_v8 }
  0xbc   :  { %v51_v11 = vmax.f32 %v50_v10, 1e-16 }
  0xbe   :  { %65 = vrsqrt.f32 %v51_v11 }
  0xc8   :  { %v66_v13 = vpop.eup %65 }
  0xc9   :  { %v53_v14 = vmul.f32 %v66_v13, %v41_v12 }
  0xcb   :  { %v54_v15 = vsub.f32 1.0, %v53_v14 }
  0xcd   :  { %56 = vst.msk [vmem:[%s161_s2] sm:$0xff] %vm55_vm1, %v54_v15 }
  0xce   :  { %61 = vsyncpa [#allocation3], 1 }
  0xcf   :  { %62 = vsyncpa [#allocation5], 1 }

</bundles_post_ra>
